<compile_context>
chip_gen: v5e
topology: v5e:2x2
jax: 0.10.0
libtpu: 0.0.40
codegen_flags: <defaults>
</compile_context>

<pallas_src>
import math
from functools import partial

import jax
import jax.numpy as jnp
from jax.experimental import pallas as pl
from jax.experimental.pallas import tpu as pltpu


def _round_up(n, m):
    return ((n + m - 1) // m) * m


def _lane_roll(x, shift):
    """jnp.roll(x, shift, axis=-1) with a static shift (two lane slices + concat)."""
    h = x.shape[-1]
    s = shift % h
    if s == 0:
        return x
    return jnp.concatenate([x[:, h - s:], x[:, :h - s]], axis=-1)


def _encoder_block_kernel(x_ref, ln1w_ref, ln1b_ref,
                          wqkv_ref, bqkv_ref, wfc_ref, bfc_ref,
                          ln2w_ref, ln2b_ref,
                          w1_ref, b1_ref, w2_ref, b2_ref,
                          out_ref, *, C, KF, eps):
    H = C * KF
    x = x_ref[...].astype(jnp.float32)                      # (TM, H)

    # ---- LayerNorm 1 (f32) --------------------------------------------------
    mu = jnp.mean(x, axis=-1, keepdims=True)
    var = jnp.mean((x - mu) ** 2, axis=-1, keepdims=True)
    xn = (x - mu) * jax.lax.rsqrt(var + eps)
    xn = xn * ln1w_ref[...] + ln1b_ref[...]

    # ---- fused per-channel QKV: one block-diagonal (H, 3H) matmul on MXU ----
    qkv = jnp.dot(xn.astype(wqkv_ref.dtype), wqkv_ref[...],
                  preferred_element_type=jnp.float32) + bqkv_ref[...]
    q = qkv[:, 0 * H:1 * H]                                  # channel-major (TM, H)
    k = qkv[:, 1 * H:2 * H]
    v = qkv[:, 2 * H:3 * H]

    # ---- criss-cross softmax, vectorized over full-width rows ---------------
    # s_d[:, i*KF+f] = q_i[f] * k_{(i+d)%C}[f] / sqrt(KF); softmax is over j=(i+d)%C.
    inv_sqrt = 1.0 / math.sqrt(KF)
    s_list = [q * _lane_roll(k, -d * KF) * inv_sqrt for d in range(C)]
    m = s_list[0]
    for d in range(1, C):
        m = jnp.maximum(m, s_list[d])                        # m_i = max_j s_{i,j}
    e_list = [jnp.exp(s - m) for s in s_list]
    den = e_list[0]
    for d in range(1, C):
        den = den + e_list[d]                                # den_i = sum_j exp(...)
    w = v * pl.reciprocal(den, approx=True)                  # w_i = v_i / den_i
    # ctx[:, j*KF+f] = sum_i attn[i, j] * v_i  (contribution from i lands at j=(i+d)%C)
    ctx = w * e_list[0]
    for d in range(1, C):
        ctx = ctx + _lane_roll(w * e_list[d], d * KF)

    # ---- shared fc_out: one block-diagonal (H, H) matmul ---------------------
    attn_out = jnp.dot(ctx.astype(wfc_ref.dtype), wfc_ref[...],
                       preferred_element_type=jnp.float32) + bfc_ref[...]

    # residual 1 (dropout == identity in eval)
    x1 = attn_out + x

    # ---- LayerNorm 2 (f32) ---------------------------------------------------
    mu2 = jnp.mean(x1, axis=-1, keepdims=True)
    var2 = jnp.mean((x1 - mu2) ** 2, axis=-1, keepdims=True)
    xn2 = (x1 - mu2) * jax.lax.rsqrt(var2 + eps)
    xn2 = xn2 * ln2w_ref[...] + ln2b_ref[...]

    # ---- MLP block: Linear -> GELU(exact, erf) -> Linear ---------------------
    h = jnp.dot(xn2.astype(w1_ref.dtype), w1_ref[...],
                preferred_element_type=jnp.float32) + b1_ref[...]
    h = 0.5 * h * (1.0 + jax.lax.erf(h * (1.0 / math.sqrt(2.0))))
    y = jnp.dot(h.astype(w2_ref.dtype), w2_ref[...],
                preferred_element_type=jnp.float32) + b2_ref[...]

    out_ref[...] = (x1 + y).astype(out_ref.dtype)


def _block_diag(w):
    """(C, kin, kout) per-channel weights -> (C*kin, C*kout) block-diagonal matrix."""
    C, kin, kout = w.shape
    eye = jnp.eye(C, dtype=w.dtype)
    return (w[:, :, None, :] * eye[:, None, :, None]).reshape(C * kin, C * kout)


def encoder_block_forward(x, params, *, tm=256, eps=1e-6, mxu_dtype=jnp.bfloat16):
    B, L, H = x.shape
    C, KF = params["wqkv"].shape[0], params["wqkv"].shape[1]
    assert H == C * KF
    M = B * L
    x2 = x.reshape(M, H)

    # ---- token tiling: pad rows so every (TM, H) tile is full ---------------
    TM = _round_up(min(tm, M), 8)
    M_pad = _round_up(M, TM)
    if M_pad != M:
        x2 = jnp.pad(x2, ((0, M_pad - M), (0, 0)))
    grid = (pl.cdiv(M_pad, TM),)

    # ---- fuse per-channel projections into block-diagonal MXU weights -------
    wqkv = params["wqkv"]                                    # (C, KF, 3KF) = W^T per channel
    bqkv = params["bqkv"][:, 0, :]                           # (C, 3KF)
    wq, wk, wv = wqkv[:, :, :KF], wqkv[:, :, KF:2 * KF], wqkv[:, :, 2 * KF:]
    wqkv_bd = jnp.concatenate(
        [_block_diag(wq), _block_diag(wk), _block_diag(wv)], axis=1).astype(mxu_dtype)  # (H, 3H)
    bqkv_full = jnp.concatenate(
        [bqkv[:, :KF].reshape(1, H), bqkv[:, KF:2 * KF].reshape(1, H),
         bqkv[:, 2 * KF:].reshape(1, H)], axis=1)            # (1, 3H), f32
    wfc_bd = _block_diag(
        jnp.broadcast_to(params["wfc"], (C, KF, KF))).astype(mxu_dtype)                 # (H, H)
    bfc_full = jnp.tile(params["bfc"], (1, C))               # (1, H), f32
    w1 = params["w1"].astype(mxu_dtype)
    w2 = params["w2"].astype(mxu_dtype)

    args = (x2, params["ln1_w"], params["ln1_b"],
            wqkv_bd, bqkv_full, wfc_bd, bfc_full,
            params["ln2_w"], params["ln2_b"],
            w1, params["b1"], w2, params["b2"])

    def fullspec(a):
        n = a.ndim
        return pl.BlockSpec(a.shape, lambda i, n=n: (0,) * n)

    # x/out tiled over tokens; weights use constant index_maps -> VMEM-resident.
    in_specs = [pl.BlockSpec((TM, H), lambda i: (i, 0))] + [fullspec(a) for a in args[1:]]

    out = pl.pallas_call(
        partial(_encoder_block_kernel, C=C, KF=KF, eps=eps),
        out_shape=jax.ShapeDtypeStruct((M_pad, H), x.dtype),
        grid=grid,
        in_specs=in_specs,
        out_specs=pl.BlockSpec((TM, H), lambda i: (i, 0)),
        compiler_params=pltpu.CompilerParams(
            dimension_semantics=("parallel",),               # megacore sharding on v7x
            vmem_limit_bytes=64 * 1024 * 1024,               # fits v5e/v6e (128 MiB) and v7x (64 MiB)
        ),
    )(*args)
    if M_pad != M:
        out = out[:M]
    return out.reshape(B, L, H)


def init_params(key, *, in_channels, k_factor, hidden_dim, mlp_dim):
    keys = jax.random.split(key, 8)
    s = 0.05
    return dict(
        ln1_w=jnp.ones((1, hidden_dim), jnp.float32),
        ln1_b=jnp.zeros((1, hidden_dim), jnp.float32),
        ln2_w=jnp.ones((1, hidden_dim), jnp.float32),
        ln2_b=jnp.zeros((1, hidden_dim), jnp.float32),
        # per-channel qkv Linear(k_factor, 3*k_factor), stored as W^T: (C, KF, 3KF)
        wqkv=jax.random.normal(keys[0], (in_channels, k_factor, 3 * k_factor), jnp.float32) * s,
        bqkv=jax.random.normal(keys[1], (in_channels, 1, 3 * k_factor), jnp.float32) * s,
        # shared fc_out Linear(k_factor, k_factor), stored as W^T
        wfc=jax.random.normal(keys[2], (k_factor, k_factor), jnp.float32) * s,
        bfc=jax.random.normal(keys[3], (1, k_factor), jnp.float32) * s,
        # MLPBlock: Linear(H, mlp_dim) -> GELU -> Linear(mlp_dim, H), stored as W^T
        w1=jax.random.normal(keys[4], (hidden_dim, mlp_dim), jnp.float32) * s,
        b1=jax.random.normal(keys[5], (1, mlp_dim), jnp.float32) * 1e-6,
        w2=jax.random.normal(keys[6], (mlp_dim, hidden_dim), jnp.float32) * s,
        b2=jax.random.normal(keys[7], (1, hidden_dim), jnp.float32) * 1e-6,
    )


def reference_forward(x, p, C, KF):
    """Pure-JAX reference mirroring the PyTorch forward exactly (for a sanity check)."""
    B, L, H = x.shape

    def ln(v, w, b):
        mu = v.mean(-1, keepdims=True)
        var = ((v - mu) ** 2).mean(-1, keepdims=True)
        return (v - mu) / jnp.sqrt(var + 1e-6) * w.reshape(-1) + b.reshape(-1)

    xn = ln(x, p["ln1_w"], p["ln1_b"])
    xc = xn.reshape(B, L, C, KF)
    qkv = jnp.einsum("blck,ckd->blcd", xc, p["wqkv"]) + p["bqkv"][:, 0, :]
    q, k, v = qkv[..., :KF], qkv[..., KF:2 * KF], qkv[..., 2 * KF:]
    qT = jnp.transpose(q, (0, 1, 3, 2))
    kT = jnp.transpose(k, (0, 1, 3, 2))
    vT = jnp.transpose(v, (0, 1, 3, 2))
    scores = qT[..., :, None] * kT[..., None, :] / math.sqrt(KF)   # (B,L,KF,C,C)
    attn = jax.nn.softmax(scores, axis=-1)
    ctx = jnp.einsum("blfij,blfi->blfj", attn, vT)                 # (B,L,KF,C)
    ctx_t = jnp.transpose(ctx, (0, 1, 3, 2))                       # (B,L,C,KF)
    ao = jnp.einsum("blcf,fg->blcg", ctx_t, p["wfc"]) + p["bfc"][0]
    ao = ao.reshape(B, L, H)
    x1 = ao + x
    y = ln(x1, p["ln2_w"], p["ln2_b"])
    h = y @ p["w1"] + p["b1"][0]
    h = 0.5 * h * (1.0 + jax.lax.erf(h / math.sqrt(2.0)))
    return x1 + (h @ p["w2"] + p["b2"][0])


if __name__ == "__main__":
    B, L = 2, 8
    in_channels, k_factor = 4, 8          # hidden_dim = in_channels * k_factor
    hidden_dim = in_channels * k_factor   # 32
    mlp_dim = 64
    # num_heads = 4  (unused by the reference forward pass)

    key = jax.random.PRNGKey(0)
    kx, kp = jax.random.split(key)
    x = jax.random.normal(kx, (B, L, hidden_dim), jnp.float32)
    params = init_params(kp, in_channels=in_channels, k_factor=k_factor,
                         hidden_dim=hidden_dim, mlp_dim=mlp_dim)

    out = encoder_block_forward(x, params)
    out = jax.block_until_ready(out)

    ref = reference_forward(x, params, in_channels, k_factor)
    assert out.shape == (B, L, hidden_dim)
    max_err = float(jnp.max(jnp.abs(out - ref)))
    # bf16 MXU operands (f32 accumulation) + approx reciprocal vs. the pure-f32
    # reference: allow 5e-3 absolute (residual path stays full f32).
    if max_err > 5e-3:
        raise SystemExit(f"mismatch vs reference: max_err={max_err}")
    print("KERNEL_OK")
</pallas_src>

<mosaic_0001>
module attributes {stable_mosaic.version = 11 : i64} {
  func.func @_encoder_block_kernel(%arg0: i32, %arg1: memref<16x32xf32, #tpu.memory_space<vmem>>, %arg2: memref<1x32xf32, #tpu.memory_space<vmem>>, %arg3: memref<1x32xf32, #tpu.memory_space<vmem>>, %arg4: memref<32x96xbf16, #tpu.memory_space<vmem>>, %arg5: memref<1x96xf32, #tpu.memory_space<vmem>>, %arg6: memref<32x32xbf16, #tpu.memory_space<vmem>>, %arg7: memref<1x32xf32, #tpu.memory_space<vmem>>, %arg8: memref<1x32xf32, #tpu.memory_space<vmem>>, %arg9: memref<1x32xf32, #tpu.memory_space<vmem>>, %arg10: memref<32x64xbf16, #tpu.memory_space<vmem>>, %arg11: memref<1x64xf32, #tpu.memory_space<vmem>>, %arg12: memref<64x32xbf16, #tpu.memory_space<vmem>>, %arg13: memref<1x32xf32, #tpu.memory_space<vmem>>, %arg14: memref<16x32xf32, #tpu.memory_space<vmem>>) attributes {dimension_semantics = [#tpu.dimension_semantics<parallel>], iteration_bounds = array<i64: 1>, scalar_prefetch = 0 : i64, scratch_operands = 0 : i64, tpu.core_type = #tpu.core_type<tc>, window_params = [{transform_indices = @transform_0, window_bounds = array<i64: 16, 32>}, {pipeline_mode = #tpu.pipeline_mode<synchronous>, transform_indices = @transform_1, window_bounds = array<i64: 1, 32>}, {pipeline_mode = #tpu.pipeline_mode<synchronous>, transform_indices = @transform_2, window_bounds = array<i64: 1, 32>}, {pipeline_mode = #tpu.pipeline_mode<synchronous>, transform_indices = @transform_3, window_bounds = array<i64: 32, 96>}, {pipeline_mode = #tpu.pipeline_mode<synchronous>, transform_indices = @transform_4, window_bounds = array<i64: 1, 96>}, {pipeline_mode = #tpu.pipeline_mode<synchronous>, transform_indices = @transform_5, window_bounds = array<i64: 32, 32>}, {pipeline_mode = #tpu.pipeline_mode<synchronous>, transform_indices = @transform_6, window_bounds = array<i64: 1, 32>}, {pipeline_mode = #tpu.pipeline_mode<synchronous>, transform_indices = @transform_7, window_bounds = array<i64: 1, 32>}, {pipeline_mode = #tpu.pipeline_mode<synchronous>, transform_indices = @transform_8, window_bounds = array<i64: 1, 32>}, {pipeline_mode = #tpu.pipeline_mode<synchronous>, transform_indices = @transform_9, window_bounds = array<i64: 32, 64>}, {pipeline_mode = #tpu.pipeline_mode<synchronous>, transform_indices = @transform_10, window_bounds = array<i64: 1, 64>}, {pipeline_mode = #tpu.pipeline_mode<synchronous>, transform_indices = @transform_11, window_bounds = array<i64: 64, 32>}, {pipeline_mode = #tpu.pipeline_mode<synchronous>, transform_indices = @transform_12, window_bounds = array<i64: 1, 32>}, {transform_indices = @transform_13, window_bounds = array<i64: 16, 32>}]} {
    %c0 = arith.constant 0 : index
    %c0_0 = arith.constant 0 : index
    %0 = vector.load %arg1[%c0, %c0_0] : memref<16x32xf32, #tpu.memory_space<vmem>>, vector<16x32xf32>
    %cst = arith.constant dense<0.000000e+00> : vector<16xf32>
    %1 = vector.multi_reduction <add>, %0, %cst [1] : vector<16x32xf32> to vector<16xf32>
    %2 = vector.shape_cast %1 : vector<16xf32> to vector<16x1xf32>
    %cst_1 = arith.constant 3.200000e+01 : f32
    %3 = vector.broadcast %cst_1 : f32 to vector<16x1xf32>
    %4 = arith.divf %2, %3 : vector<16x1xf32>
    %5 = vector.broadcast %4 : vector<16x1xf32> to vector<16x32xf32>
    %6 = arith.subf %0, %5 : vector<16x32xf32>
    %7 = arith.mulf %6, %6 : vector<16x32xf32>
    %cst_2 = arith.constant dense<0.000000e+00> : vector<16xf32>
    %8 = vector.multi_reduction <add>, %7, %cst_2 [1] : vector<16x32xf32> to vector<16xf32>
    %9 = vector.shape_cast %8 : vector<16xf32> to vector<16x1xf32>
    %cst_3 = arith.constant 3.200000e+01 : f32
    %10 = vector.broadcast %cst_3 : f32 to vector<16x1xf32>
    %11 = arith.divf %9, %10 : vector<16x1xf32>
    %12 = vector.broadcast %4 : vector<16x1xf32> to vector<16x32xf32>
    %13 = arith.subf %0, %12 : vector<16x32xf32>
    %cst_4 = arith.constant 9.99999997E-7 : f32
    %14 = vector.broadcast %cst_4 : f32 to vector<16x1xf32>
    %15 = arith.addf %11, %14 : vector<16x1xf32>
    %16 = math.rsqrt %15 : vector<16x1xf32>
    %17 = vector.broadcast %16 : vector<16x1xf32> to vector<16x32xf32>
    %18 = arith.mulf %13, %17 : vector<16x32xf32>
    %c0_5 = arith.constant 0 : index
    %c0_6 = arith.constant 0 : index
    %19 = vector.load %arg2[%c0_5, %c0_6] : memref<1x32xf32, #tpu.memory_space<vmem>>, vector<1x32xf32>
    %20 = vector.broadcast %19 : vector<1x32xf32> to vector<16x32xf32>
    %21 = arith.mulf %18, %20 : vector<16x32xf32>
    %c0_7 = arith.constant 0 : index
    %c0_8 = arith.constant 0 : index
    %22 = vector.load %arg3[%c0_7, %c0_8] : memref<1x32xf32, #tpu.memory_space<vmem>>, vector<1x32xf32>
    %23 = vector.broadcast %22 : vector<1x32xf32> to vector<16x32xf32>
    %24 = arith.addf %21, %23 : vector<16x32xf32>
    %25 = arith.truncf %24 : vector<16x32xf32> to vector<16x32xbf16>
    %c0_9 = arith.constant 0 : index
    %c0_10 = arith.constant 0 : index
    %26 = vector.load %arg4[%c0_9, %c0_10] : memref<32x96xbf16, #tpu.memory_space<vmem>>, vector<32x96xbf16>
    %cst_11 = arith.constant dense<0.000000e+00> : vector<16x96xf32>
    %27 = tpu.matmul %25, %26, %cst_11 {dimension_numbers = #tpu.dot_dimension_numbers<[1], [0], [0], [1], [0, 0, 1, 1], [], []>} : vector<16x32xbf16>, vector<32x96xbf16>, vector<16x96xf32> -> vector<16x96xf32>
    %c0_12 = arith.constant 0 : index
    %c0_13 = arith.constant 0 : index
    %28 = vector.load %arg5[%c0_12, %c0_13] : memref<1x96xf32, #tpu.memory_space<vmem>>, vector<1x96xf32>
    %29 = vector.broadcast %28 : vector<1x96xf32> to vector<16x96xf32>
    %30 = arith.addf %27, %29 : vector<16x96xf32>
    %31 = vector.extract_strided_slice %30 {offsets = [0, 0], sizes = [16, 32], strides = [1, 1]} : vector<16x96xf32> to vector<16x32xf32>
    %32 = vector.extract_strided_slice %30 {offsets = [0, 32], sizes = [16, 32], strides = [1, 1]} : vector<16x96xf32> to vector<16x32xf32>
    %33 = vector.extract_strided_slice %30 {offsets = [0, 64], sizes = [16, 32], strides = [1, 1]} : vector<16x96xf32> to vector<16x32xf32>
    %34 = arith.mulf %31, %32 : vector<16x32xf32>
    %cst_14 = arith.constant 0.353553385 : f32
    %35 = vector.broadcast %cst_14 : f32 to vector<16x32xf32>
    %36 = arith.mulf %34, %35 : vector<16x32xf32>
    %37 = vector.extract_strided_slice %32 {offsets = [0, 8], sizes = [16, 24], strides = [1, 1]} : vector<16x32xf32> to vector<16x24xf32>
    %38 = vector.extract_strided_slice %32 {offsets = [0, 0], sizes = [16, 8], strides = [1, 1]} : vector<16x32xf32> to vector<16x8xf32>
    %39 = tpu.concatenate %37, %38 in 1 : vector<16x24xf32>, vector<16x8xf32> -> vector<16x32xf32>
    %40 = arith.mulf %31, %39 : vector<16x32xf32>
    %cst_15 = arith.constant 0.353553385 : f32
    %41 = vector.broadcast %cst_15 : f32 to vector<16x32xf32>
    %42 = arith.mulf %40, %41 : vector<16x32xf32>
    %43 = vector.extract_strided_slice %32 {offsets = [0, 16], sizes = [16, 16], strides = [1, 1]} : vector<16x32xf32> to vector<16x16xf32>
    %44 = vector.extract_strided_slice %32 {offsets = [0, 0], sizes = [16, 16], strides = [1, 1]} : vector<16x32xf32> to vector<16x16xf32>
    %45 = tpu.concatenate %43, %44 in 1 : vector<16x16xf32>, vector<16x16xf32> -> vector<16x32xf32>
    %46 = arith.mulf %31, %45 : vector<16x32xf32>
    %cst_16 = arith.constant 0.353553385 : f32
    %47 = vector.broadcast %cst_16 : f32 to vector<16x32xf32>
    %48 = arith.mulf %46, %47 : vector<16x32xf32>
    %49 = vector.extract_strided_slice %32 {offsets = [0, 24], sizes = [16, 8], strides = [1, 1]} : vector<16x32xf32> to vector<16x8xf32>
    %50 = vector.extract_strided_slice %32 {offsets = [0, 0], sizes = [16, 24], strides = [1, 1]} : vector<16x32xf32> to vector<16x24xf32>
    %51 = tpu.concatenate %49, %50 in 1 : vector<16x8xf32>, vector<16x24xf32> -> vector<16x32xf32>
    %52 = arith.mulf %31, %51 : vector<16x32xf32>
    %cst_17 = arith.constant 0.353553385 : f32
    %53 = vector.broadcast %cst_17 : f32 to vector<16x32xf32>
    %54 = arith.mulf %52, %53 : vector<16x32xf32>
    %55 = arith.maximumf %36, %42 : vector<16x32xf32>
    %56 = arith.maximumf %55, %48 : vector<16x32xf32>
    %57 = arith.maximumf %56, %54 : vector<16x32xf32>
    %58 = arith.subf %36, %57 : vector<16x32xf32>
    %59 = math.exp %58 : vector<16x32xf32>
    %60 = arith.subf %42, %57 : vector<16x32xf32>
    %61 = math.exp %60 : vector<16x32xf32>
    %62 = arith.subf %48, %57 : vector<16x32xf32>
    %63 = math.exp %62 : vector<16x32xf32>
    %64 = arith.subf %54, %57 : vector<16x32xf32>
    %65 = math.exp %64 : vector<16x32xf32>
    %66 = arith.addf %59, %61 : vector<16x32xf32>
    %67 = arith.addf %66, %63 : vector<16x32xf32>
    %68 = arith.addf %67, %65 : vector<16x32xf32>
    %69 = tpu.reciprocal %68 {approx = true} : vector<16x32xf32> -> vector<16x32xf32>
    %70 = arith.mulf %33, %69 : vector<16x32xf32>
    %71 = arith.mulf %70, %59 : vector<16x32xf32>
    %72 = arith.mulf %70, %61 : vector<16x32xf32>
    %73 = vector.extract_strided_slice %72 {offsets = [0, 24], sizes = [16, 8], strides = [1, 1]} : vector<16x32xf32> to vector<16x8xf32>
    %74 = vector.extract_strided_slice %72 {offsets = [0, 0], sizes = [16, 24], strides = [1, 1]} : vector<16x32xf32> to vector<16x24xf32>
    %75 = tpu.concatenate %73, %74 in 1 : vector<16x8xf32>, vector<16x24xf32> -> vector<16x32xf32>
    %76 = arith.addf %71, %75 : vector<16x32xf32>
    %77 = arith.mulf %70, %63 : vector<16x32xf32>
    %78 = vector.extract_strided_slice %77 {offsets = [0, 16], sizes = [16, 16], strides = [1, 1]} : vector<16x32xf32> to vector<16x16xf32>
    %79 = vector.extract_strided_slice %77 {offsets = [0, 0], sizes = [16, 16], strides = [1, 1]} : vector<16x32xf32> to vector<16x16xf32>
    %80 = tpu.concatenate %78, %79 in 1 : vector<16x16xf32>, vector<16x16xf32> -> vector<16x32xf32>
    %81 = arith.addf %76, %80 : vector<16x32xf32>
    %82 = arith.mulf %70, %65 : vector<16x32xf32>
    %83 = vector.extract_strided_slice %82 {offsets = [0, 8], sizes = [16, 24], strides = [1, 1]} : vector<16x32xf32> to vector<16x24xf32>
    %84 = vector.extract_strided_slice %82 {offsets = [0, 0], sizes = [16, 8], strides = [1, 1]} : vector<16x32xf32> to vector<16x8xf32>
    %85 = tpu.concatenate %83, %84 in 1 : vector<16x24xf32>, vector<16x8xf32> -> vector<16x32xf32>
    %86 = arith.addf %81, %85 : vector<16x32xf32>
    %87 = arith.truncf %86 : vector<16x32xf32> to vector<16x32xbf16>
    %c0_18 = arith.constant 0 : index
    %c0_19 = arith.constant 0 : index
    %88 = vector.load %arg6[%c0_18, %c0_19] : memref<32x32xbf16, #tpu.memory_space<vmem>>, vector<32x32xbf16>
    %cst_20 = arith.constant dense<0.000000e+00> : vector<16x32xf32>
    %89 = tpu.matmul %87, %88, %cst_20 {dimension_numbers = #tpu.dot_dimension_numbers<[1], [0], [0], [1], [0, 0, 1, 1], [], []>} : vector<16x32xbf16>, vector<32x32xbf16>, vector<16x32xf32> -> vector<16x32xf32>
    %c0_21 = arith.constant 0 : index
    %c0_22 = arith.constant 0 : index
    %90 = vector.load %arg7[%c0_21, %c0_22] : memref<1x32xf32, #tpu.memory_space<vmem>>, vector<1x32xf32>
    %91 = vector.broadcast %90 : vector<1x32xf32> to vector<16x32xf32>
    %92 = arith.addf %89, %91 : vector<16x32xf32>
    %93 = arith.addf %92, %0 : vector<16x32xf32>
    %cst_23 = arith.constant dense<0.000000e+00> : vector<16xf32>
    %94 = vector.multi_reduction <add>, %93, %cst_23 [1] : vector<16x32xf32> to vector<16xf32>
    %95 = vector.shape_cast %94 : vector<16xf32> to vector<16x1xf32>
    %cst_24 = arith.constant 3.200000e+01 : f32
    %96 = vector.broadcast %cst_24 : f32 to vector<16x1xf32>
    %97 = arith.divf %95, %96 : vector<16x1xf32>
    %98 = vector.broadcast %97 : vector<16x1xf32> to vector<16x32xf32>
    %99 = arith.subf %93, %98 : vector<16x32xf32>
    %100 = arith.mulf %99, %99 : vector<16x32xf32>
    %cst_25 = arith.constant dense<0.000000e+00> : vector<16xf32>
    %101 = vector.multi_reduction <add>, %100, %cst_25 [1] : vector<16x32xf32> to vector<16xf32>
    %102 = vector.shape_cast %101 : vector<16xf32> to vector<16x1xf32>
    %cst_26 = arith.constant 3.200000e+01 : f32
    %103 = vector.broadcast %cst_26 : f32 to vector<16x1xf32>
    %104 = arith.divf %102, %103 : vector<16x1xf32>
    %105 = vector.broadcast %97 : vector<16x1xf32> to vector<16x32xf32>
    %106 = arith.subf %93, %105 : vector<16x32xf32>
    %cst_27 = arith.constant 9.99999997E-7 : f32
    %107 = vector.broadcast %cst_27 : f32 to vector<16x1xf32>
    %108 = arith.addf %104, %107 : vector<16x1xf32>
    %109 = math.rsqrt %108 : vector<16x1xf32>
    %110 = vector.broadcast %109 : vector<16x1xf32> to vector<16x32xf32>
    %111 = arith.mulf %106, %110 : vector<16x32xf32>
    %c0_28 = arith.constant 0 : index
    %c0_29 = arith.constant 0 : index
    %112 = vector.load %arg8[%c0_28, %c0_29] : memref<1x32xf32, #tpu.memory_space<vmem>>, vector<1x32xf32>
    %113 = vector.broadcast %112 : vector<1x32xf32> to vector<16x32xf32>
    %114 = arith.mulf %111, %113 : vector<16x32xf32>
    %c0_30 = arith.constant 0 : index
    %c0_31 = arith.constant 0 : index
    %115 = vector.load %arg9[%c0_30, %c0_31] : memref<1x32xf32, #tpu.memory_space<vmem>>, vector<1x32xf32>
    %116 = vector.broadcast %115 : vector<1x32xf32> to vector<16x32xf32>
    %117 = arith.addf %114, %116 : vector<16x32xf32>
    %118 = arith.truncf %117 : vector<16x32xf32> to vector<16x32xbf16>
    %c0_32 = arith.constant 0 : index
    %c0_33 = arith.constant 0 : index
    %119 = vector.load %arg10[%c0_32, %c0_33] : memref<32x64xbf16, #tpu.memory_space<vmem>>, vector<32x64xbf16>
    %cst_34 = arith.constant dense<0.000000e+00> : vector<16x64xf32>
    %120 = tpu.matmul %118, %119, %cst_34 {dimension_numbers = #tpu.dot_dimension_numbers<[1], [0], [0], [1], [0, 0, 1, 1], [], []>} : vector<16x32xbf16>, vector<32x64xbf16>, vector<16x64xf32> -> vector<16x64xf32>
    %c0_35 = arith.constant 0 : index
    %c0_36 = arith.constant 0 : index
    %121 = vector.load %arg11[%c0_35, %c0_36] : memref<1x64xf32, #tpu.memory_space<vmem>>, vector<1x64xf32>
    %122 = vector.broadcast %121 : vector<1x64xf32> to vector<16x64xf32>
    %123 = arith.addf %120, %122 : vector<16x64xf32>
    %cst_37 = arith.constant 5.000000e-01 : f32
    %124 = vector.broadcast %cst_37 : f32 to vector<16x64xf32>
    %125 = arith.mulf %124, %123 : vector<16x64xf32>
    %cst_38 = arith.constant 0.707106769 : f32
    %126 = vector.broadcast %cst_38 : f32 to vector<16x64xf32>
    %127 = arith.mulf %123, %126 : vector<16x64xf32>
    %128 = math.erf %127 : vector<16x64xf32>
    %cst_39 = arith.constant 1.000000e+00 : f32
    %129 = vector.broadcast %cst_39 : f32 to vector<16x64xf32>
    %130 = arith.addf %129, %128 : vector<16x64xf32>
    %131 = arith.mulf %125, %130 : vector<16x64xf32>
    %132 = arith.truncf %131 : vector<16x64xf32> to vector<16x64xbf16>
    %c0_40 = arith.constant 0 : index
    %c0_41 = arith.constant 0 : index
    %133 = vector.load %arg12[%c0_40, %c0_41] : memref<64x32xbf16, #tpu.memory_space<vmem>>, vector<64x32xbf16>
    %cst_42 = arith.constant dense<0.000000e+00> : vector<16x32xf32>
    %134 = tpu.matmul %132, %133, %cst_42 {dimension_numbers = #tpu.dot_dimension_numbers<[1], [0], [0], [1], [0, 0, 1, 1], [], []>} : vector<16x64xbf16>, vector<64x32xbf16>, vector<16x32xf32> -> vector<16x32xf32>
    %c0_43 = arith.constant 0 : index
    %c0_44 = arith.constant 0 : index
    %135 = vector.load %arg13[%c0_43, %c0_44] : memref<1x32xf32, #tpu.memory_space<vmem>>, vector<1x32xf32>
    %136 = vector.broadcast %135 : vector<1x32xf32> to vector<16x32xf32>
    %137 = arith.addf %134, %136 : vector<16x32xf32>
    %138 = arith.addf %93, %137 : vector<16x32xf32>
    %c0_45 = arith.constant 0 : index
    %c0_46 = arith.constant 0 : index
    %139 = vector.load %arg14[%c0_45, %c0_46] : memref<16x32xf32, #tpu.memory_space<vmem>>, vector<16x32xf32>
    tpu.vector_store %arg14[%c0_45, %c0_46], %138 {strides = array<i32>} : memref<16x32xf32, #tpu.memory_space<vmem>>, vector<16x32xf32>,
    return
  }
  func.func @transform_0(%arg0: i32) -> (i32, i32) {
    %c0_i32 = arith.constant 0 : i32
    %c0_i32_0 = arith.constant 0 : i32
    return %arg0, %c0_i32 : i32, i32
  }
  func.func @transform_1(%arg0: i32) -> (i32, i32) {
    %c0_i32 = arith.constant 0 : i32
    %c0_i32_0 = arith.constant 0 : i32
    %c0_i32_1 = arith.constant 0 : i32
    return %c0_i32, %c0_i32_0 : i32, i32
  }
  func.func @transform_2(%arg0: i32) -> (i32, i32) {
    %c0_i32 = arith.constant 0 : i32
    %c0_i32_0 = arith.constant 0 : i32
    %c0_i32_1 = arith.constant 0 : i32
    return %c0_i32, %c0_i32_0 : i32, i32
  }
  func.func @transform_3(%arg0: i32) -> (i32, i32) {
    %c0_i32 = arith.constant 0 : i32
    %c0_i32_0 = arith.constant 0 : i32
    %c0_i32_1 = arith.constant 0 : i32
    return %c0_i32, %c0_i32_0 : i32, i32
  }
  func.func @transform_4(%arg0: i32) -> (i32, i32) {
    %c0_i32 = arith.constant 0 : i32
    %c0_i32_0 = arith.constant 0 : i32
    %c0_i32_1 = arith.constant 0 : i32
    return %c0_i32, %c0_i32_0 : i32, i32
  }
  func.func @transform_5(%arg0: i32) -> (i32, i32) {
    %c0_i32 = arith.constant 0 : i32
    %c0_i32_0 = arith.constant 0 : i32
    %c0_i32_1 = arith.constant 0 : i32
    return %c0_i32, %c0_i32_0 : i32, i32
  }
  func.func @transform_6(%arg0: i32) -> (i32, i32) {
    %c0_i32 = arith.constant 0 : i32
    %c0_i32_0 = arith.constant 0 : i32
    %c0_i32_1 = arith.constant 0 : i32
    return %c0_i32, %c0_i32_0 : i32, i32
  }
  func.func @transform_7(%arg0: i32) -> (i32, i32) {
    %c0_i32 = arith.constant 0 : i32
    %c0_i32_0 = arith.constant 0 : i32
    %c0_i32_1 = arith.constant 0 : i32
    return %c0_i32, %c0_i32_0 : i32, i32
  }
  func.func @transform_8(%arg0: i32) -> (i32, i32) {
    %c0_i32 = arith.constant 0 : i32
    %c0_i32_0 = arith.constant 0 : i32
    %c0_i32_1 = arith.constant 0 : i32
    return %c0_i32, %c0_i32_0 : i32, i32
  }
  func.func @transform_9(%arg0: i32) -> (i32, i32) {
    %c0_i32 = arith.constant 0 : i32
    %c0_i32_0 = arith.constant 0 : i32
    %c0_i32_1 = arith.constant 0 : i32
    return %c0_i32, %c0_i32_0 : i32, i32
  }
  func.func @transform_10(%arg0: i32) -> (i32, i32) {
    %c0_i32 = arith.constant 0 : i32
    %c0_i32_0 = arith.constant 0 : i32
    %c0_i32_1 = arith.constant 0 : i32
    return %c0_i32, %c0_i32_0 : i32, i32
  }
  func.func @transform_11(%arg0: i32) -> (i32, i32) {
    %c0_i32 = arith.constant 0 : i32
    %c0_i32_0 = arith.constant 0 : i32
    %c0_i32_1 = arith.constant 0 : i32
    return %c0_i32, %c0_i32_0 : i32, i32
  }
  func.func @transform_12(%arg0: i32) -> (i32, i32) {
    %c0_i32 = arith.constant 0 : i32
    %c0_i32_0 = arith.constant 0 : i32
    %c0_i32_1 = arith.constant 0 : i32
    return %c0_i32, %c0_i32_0 : i32, i32
  }
  func.func @transform_13(%arg0: i32) -> (i32, i32) {
    %c0_i32 = arith.constant 0 : i32
    %c0_i32_0 = arith.constant 0 : i32
    return %arg0, %c0_i32 : i32, i32
  }
}

</mosaic_0001>

<bundles_post_ra>
// kernel: tpu_custom_call.1
= control target key start
LH: loop header
LB: loop body
LE: loop exit
PB: predicated region body
PF: predicated region fallthrough
CT: control target
= control target key end

     0   :  { %18 = vsyncpa [#allocation3], 0  ;;  %s1199_s0 = inlined_call_operand.vmem [shape: f32[16,32], index: 0, kind: input, shape index: {}]   ;;  %s1200_s1 = inlined_call_operand.hbm [shape: f32[1,32], index: 1, kind: input, shape index: {}]   ;;  %s1201_s2 = inlined_call_operand.vmem [shape: f32[1,32], index: 2, kind: input, shape index: {}]   ;;  %s1202_s3 = inlined_call_operand.vmem [shape: bf16[32,96], index: 3, kind: input, shape index: {}]   ;;  %s1203_s4 = inlined_call_operand.vmem [shape: f32[1,96], index: 4, kind: input, shape index: {}]   ;;  %s1204_s5 = inlined_call_operand.vmem [shape: bf16[32,32], index: 5, kind: input, shape index: {}]   ;;  %s1205_s6 = inlined_call_operand.vmem [shape: f32[1,32], index: 6, kind: input, shape index: {}]   ;;  %s1206_s7 = inlined_call_operand.vmem [shape: f32[1,32], index: 7, kind: input, shape index: {}]   ;;  %s1207_s8 = inlined_call_operand.vmem [shape: f32[1,32], index: 8, kind: input, shape index: {}]   ;;  %s1208_s9 = inlined_call_operand.hbm [shape: bf16[32,64], index: 9, kind: input, shape index: {}]   ;;  %s1209_s10 = inlined_call_operand.vmem [shape: f32[1,64], index: 10, kind: input, shape index: {}]   ;;  %s1210_s11 = inlined_call_operand.vmem [shape: bf16[64,32], index: 11, kind: input, shape index: {}]   ;;  %s1211_s12 = inlined_call_operand.vmem [shape: f32[1,32], index: 12, kind: input, shape index: {}]   ;;  %s1212_s13 = inlined_call_operand.hbm [shape: f32[16,32], index: 13, kind: output, shape index: {}]  }
   0x1   :  { %19 = vsyncpa [#allocation6], 0 }
   0x2   :  { %20 = vsyncpa [#allocation4], 0  ;;  %s28_s27 = sshll.u32 %s1200_s1, 4  ;;  %s913_s28 = smov [#allocation2]   ;;  %s29_s27 = int_to_ptr.hbm [resolvable:$true] %s28_s27 }
   0x3   :  { %s30_s29 = sshll.u32 %s913_s28, 4  ;;  %s52_s15 = sshll.u32 %s1208_s9, 4  ;;  %s31_s29 = int_to_ptr.vmem [resolvable:$true] %s30_s29  ;;  %s53_s15 = int_to_ptr.hbm [resolvable:$true] %s52_s15 }
   0x4   :  { %33 = dma.hbm_to_vmem [thread:$0]  %s29_s27, 16, %s31_s29, [#allocation3]  }
   0x5   :  { %s914_s16 = smov [#allocation5]   ;;  %s915_s18 = smov 64  }
   0x6   :  { %s54_s17 = sshll.u32 %s914_s16, 4  ;;  %s916_s19 = smov 4   ;;  %s55_s17 = int_to_ptr.vmem [resolvable:$true] %s54_s17 }
   0x7   :  { %60 = dma.hbm_to_vmem [thread:$0]  %s53_s15, 256, %s55_s17, [#allocation6], %s915_s18, %s915_s18, %s916_s19  }
   0x8   :  { %907 = dma.done.wait [#allocation3], 16  }
   0x9   :  { %908 = vsyncadd [#allocation3], 4294967280 }
   0xa   :  { %909 = dma.done.wait [#allocation6], 256  }
   0xb   :  { %910 = vsyncadd [#allocation6], 4294967040  ;;  %vm78_vm0 = vcmask 261120   ;;  %v1012_v0 = vld [vmem:[%s1199_s0] sm:$0xff]  ;;  %v1019_v2 = vld [vmem:[%s1199_s0 + $0x8] sm:$0xff]  ;;  %v917_v4 = vmov 32.0  }
   0xc   :  { %v79_v1 = vsel %vm78_vm0, %v1012_v0, 0.0  ;;  %v82_v3 = vsel %vm78_vm0, %v1019_v2, 0.0  ;;  %801 = vrcp.f32 %v917_v4  ;;  %v766_v21 = vld [vmem:[%s1202_s3 + $0x8] sm:$0xff]  ;;  %v765_v23 = vld [vmem:[%s1202_s3] sm:$0xff]  ;;  %s918_s28 = smov 120   ;;  %s919_s29 = smov 88  }
   0xd   :  { %80 = vadd.xlane.f32.xlu0 %v79_v1  ;;  %172 = vmatpush.bf16.msra.mxu0 %v766_v21  ;;  %v793_v42 = vld [vmem:[#allocation2] ss:$0 sm:$0xff]  ;;  %s922_s30 = smov 112   ;;  %s923_s14 = smov 80   ;;  %vm204_vm8 = vcmask 195584   ;;  %vm223_vm9 = vcmask 130048  }
   0xe   :  { %v794_v47 = vld [vmem:[%s1201_s2] ss:$0 sm:$0xff]  ;;  %s920_s2 = smov 72   ;;  %s924_s15 = smov 104   ;;  %vm242_vm10 = vcmask 64512  }
   0xf   :  { %v795_v52 = vld [vmem:[%s1203_s4] ss:$0 sm:$0xff]  ;;  %s921_s4 = smov 96   ;;  %s925_s16 = smov 48  }
  0x10   :  { %s926_s17 = smov 40   ;;  %s927_s19 = smov 56  }
  0x11   :  { %173 = vmatpush.bf16.msra.mxu0 %v765_v23 }
  0x12   :  { %v802_v5 = vpop.eup %801 }
  0x13   :  { %v86_v6 = vmul.f32 32.0, %v802_v5  ;;  %vm90_vm1 = vweird.f32 %v802_v5 }
  0x15   :  { %83 = vadd.xlane.f32.xlu0 %v82_v3  ;;  %v87_v7 = vsub.f32 1.0, %v86_v6 }
  0x17   :  { %v88_v8 = vmul.f32 %v802_v5, %v87_v7 }
  0x19   :  { %v89_v9 = vadd.f32 %v802_v5, %v88_v8 }
  0x1b   :  { %v1023_v10 = vsel %vm90_vm1, %v802_v5, %v89_v9 }
  0x80   :  { %v81_v11 = vpop.xlane.xlu0 %80 }
  0x81   :  { %v92_v12 = vmul.f32 %v1023_v10, %v81_v11 }
  0x83   :  { %v94_v13 = vsub.f32 %v1012_v0, %v92_v12 }
  0x85   :  { %v96_v14 = vmul.f32 %v94_v13, %v94_v13 }
  0x87   :  { %v98_v15 = vsel %vm78_vm0, %v96_v14, 0.0 }
  0x88   :  { %99 = vadd.xlane.f32.xlu1 %v98_v15  ;;  %v84_v16 = vpop.xlane.xlu0 %83 }
  0x89   :  { %v93_v17 = vmul.f32 %v1023_v10, %v84_v16 }
  0x8b   :  { %v95_v18 = vsub.f32 %v1019_v2, %v93_v17 }
  0x8d   :  { %v97_v19 = vmul.f32 %v95_v18, %v95_v18 }
  0x8f   :  { %v101_v20 = vsel %vm78_vm0, %v97_v19, 0.0 }
  0x90   :  { %102 = vadd.xlane.f32.xlu1 %v101_v20 }
  0xfb   :  { %v100_v22 = vpop.xlane.xlu1 %99 }
  0xfc   :  { %v104_v24 = vmul.f32 %v100_v22, %v1023_v10 }
  0xfe   :  { %v106_v25 = vadd.f32 1e-06, %v104_v24 }
 0x100   :  { %803 = vrsqrt.f32 %v106_v25  ;;  %vm114_vm3 = vweird.f32 %v106_v25 }
 0x103   :  { %v103_v26 = vpop.xlane.xlu1 %102 }
 0x104   :  { %v105_v27 = vmul.f32 %v103_v26, %v1023_v10 }
 0x106   :  { %v804_v28 = vpop.eup %803  ;;  %v107_v29 = vadd.f32 1e-06, %v105_v27 }
 0x107   :  { %v109_v30 = vmul.f32 %v804_v28, %v106_v25  ;;  %vm115_vm2 = vweird.f32 %v804_v28 }
 0x108   :  { %805 = vrsqrt.f32 %v107_v29  ;;  %vm116_vm4 = vmor %vm114_vm3, %vm115_vm2  ;;  %vm124_vm6 = vweird.f32 %v107_v29 }
 0x109   :  { %v110_v31 = vmul.f32 %v804_v28, %v109_v30 }
 0x10b   :  { %v111_v32 = vmul.f32 0.5, %v110_v31 }
 0x10d   :  { %v112_v33 = vsub.f32 1.5, %v111_v32 }
 0x10e   :  { %v806_v34 = vpop.eup %805 }
 0x10f   :  { %v113_v35 = vmul.f32 %v804_v28, %v112_v33  ;;  %v119_v36 = vmul.f32 %v806_v34, %v107_v29  ;;  %vm125_vm5 = vweird.f32 %v806_v34 }
 0x110   :  { %vm126_vm7 = vmor %vm124_vm6, %vm125_vm5 }
 0x111   :  { %v120_v37 = vmul.f32 %v806_v34, %v119_v36  ;;  %v117_v38 = vsel %vm116_vm4, %v804_v28, %v113_v35 }
 0x112   :  { %v128_v41 = vmul.f32 %v117_v38, %v94_v13 }
 0x113   :  { %v121_v39 = vmul.f32 0.5, %v120_v37 }
 0x114   :  { %v134_v46 = vmul.f32 %v793_v42, %v128_v41 }
 0x115   :  { %v122_v40 = vsub.f32 1.5, %v121_v39 }
 0x116   :  { %v140_v49 = vadd.f32 %v794_v47, %v134_v46 }
 0x117   :  { %v123_v43 = vmul.f32 %v806_v34, %v122_v40 }
 0x119   :  { %v127_v44 = vsel %vm126_vm7, %v806_v34, %v123_v43 }
 0x11a   :  { %v129_v45 = vmul.f32 %v127_v44, %v95_v18 }
 0x11c   :  { %v135_v48 = vmul.f32 %v793_v42, %v129_v45 }
 0x11e   :  { %v141_v50 = vadd.f32 %v794_v47, %v135_v48 }
 0x120   :  { %v142_v51 = vpack.c.bf16 %v141_v50, %v140_v49 }
 0x122   :  { %727 = vmatmul.msk.bf16.vlgmr.msra.gmra.mxu0 %vm78_vm0, %v142_v51 }
 0x19f   :  { %v175_v53 = vpop.f32.mrf.mxu0 }
 0x1a0   :  { %v1046_v54 = vadd.f32 %v795_v52, %v175_v53 }
 0x1a2   :  { %198 = vrot.lane.b32.xlu0 %v1046_v54, %s918_s28  ;;  %192 = vrot.lane.b32.xlu2 %v1046_v54, %s919_s29 }
 0x1a7   :  { %v177_v55 = vpop.f32.mrf.mxu0 }
 0x1a8   :  { %v1051_v56 = vadd.f32 %v795_v52, %v177_v55 }
 0x1aa   :  { %200 = vrot.lane.b32.xlu1 %v1051_v56, %s918_s28  ;;  %230 = vrot.lane.b32.xlu0 %v1046_v54, %s920_s2 }
 0x1ab   :  { %182 = vrot.lane.b32.xlu2 %v1046_v54, %s921_s4 }
 0x1b2   :  { %219 = vrot.lane.b32.xlu1 %v1051_v56, %s922_s30  ;;  %213 = vrot.lane.b32.xlu0 %v1051_v56, %s923_s14 }
 0x1b3   :  { %211 = vrot.lane.b32.xlu2 %v1046_v54, %s923_s14 }
 0x1ba   :  { %236 = vrot.lane.b32.xlu1 %v1046_v54, %s924_s15  ;;  %238 = vrot.lane.b32.xlu0 %v1051_v56, %s924_s15 }
 0x1bb   :  { %217 = vrot.lane.b32.xlu2 %v1046_v54, %s922_s30 }
 0x1c3   :  { %194 = vrot.lane.b32.xlu2 %v1051_v56, %s919_s29 }
 0x1cb   :  { %184 = vrot.lane.b32.xlu2 %v1051_v56, %s921_s4  ;;  %s928_s4 = smov [#allocation7]  }
 0x1cc   :  { %s703_s30 = sshll.u32 %s928_s4, 4  ;;  %s704_s30 = int_to_ptr.vmem [resolvable:$true] %s703_s30 }
 0x1d3   :  { %232 = vrot.lane.b32.xlu2 %v1051_v56, %s920_s2 }
 0x1fc   :  { %v193_v57 = vpop.permute.xlu2 %192 }
 0x205   :  { %v183_v58 = vpop.permute.xlu2 %182 }
 0x206   :  { %v188_v9 = vmul.f32 %v183_v58, %v1046_v54 }
 0x208   :  { %v190_v18 = vmul.f32 0.35355338, %v188_v9 }
 0x20d   :  { %v212_v59 = vpop.permute.xlu2 %211 }
 0x214   :  { %v199_v60 = vpop.permute.xlu0 %198 }
 0x215   :  { %v218_v61 = vpop.permute.xlu2 %217  ;;  %v205_v3 = vsel %vm204_vm8, %v193_v57, %v199_v60 }
 0x216   :  { %v207_v4 = vmul.f32 %v205_v3, %v1046_v54  ;;  %v224_v13 = vsel %vm223_vm9, %v212_v59, %v218_v61 }
 0x217   :  { %v226_v19 = vmul.f32 %v224_v13, %v1046_v54 }
 0x218   :  { %v209_v15 = vmul.f32 0.35355338, %v207_v4 }
 0x219   :  { %v228_v28 = vmul.f32 0.35355338, %v226_v19 }
 0x21a   :  { %v249_v21 = vmax.f32 %v190_v18, %v209_v15 }
 0x21c   :  { %v201_v62 = vpop.permute.xlu1 %200  ;;  %v231_v63 = vpop.permute.xlu0 %230  ;;  %v251_v32 = vmax.f32 %v249_v21, %v228_v28 }
 0x21d   :  { %v195_v1 = vpop.permute.xlu2 %194 }
 0x21e   :  { %v206_v5 = vsel %vm204_vm8, %v195_v1, %v201_v62 }
 0x21f   :  { %v208_v14 = vmul.f32 %v206_v5, %v1051_v56 }
 0x221   :  { %v210_v20 = vmul.f32 0.35355338, %v208_v14 }
 0x224   :  { %v220_v6 = vpop.permute.xlu1 %219  ;;  %v214_v7 = vpop.permute.xlu0 %213 }
 0x225   :  { %v185_v8 = vpop.permute.xlu2 %184  ;;  %v225_v11 = vsel %vm223_vm9, %v214_v7, %v220_v6 }
 0x226   :  { %v189_v12 = vmul.f32 %v185_v8, %v1051_v56  ;;  %v227_v16 = vmul.f32 %v225_v11, %v1051_v56 }
 0x228   :  { %v191_v17 = vmul.f32 0.35355338, %v189_v12  ;;  %v229_v24 = vmul.f32 0.35355338, %v227_v16 }
 0x22a   :  { %v250_v25 = vmax.f32 %v191_v17, %v210_v20 }
 0x22c   :  { %v237_v22 = vpop.permute.xlu1 %236  ;;  %v239_v23 = vpop.permute.xlu0 %238  ;;  %v252_v34 = vmax.f32 %v250_v25, %v229_v24 }
 0x22d   :  { %v243_v26 = vsel %vm242_vm10, %v231_v63, %v237_v22  ;;  %v233_v27 = vpop.permute.xlu2 %232 }
 0x22e   :  { %v245_v29 = vmul.f32 %v243_v26, %v1046_v54  ;;  %v244_v30 = vsel %vm242_vm10, %v233_v27, %v239_v23 }
 0x22f   :  { %v246_v31 = vmul.f32 %v244_v30, %v1051_v56 }
 0x230   :  { %v247_v33 = vmul.f32 0.35355338, %v245_v29 }
 0x231   :  { %v248_v35 = vmul.f32 0.35355338, %v246_v31 }
 0x232   :  { %v253_v36 = vmax.f32 %v251_v32, %v247_v33 }
 0x233   :  { %v254_v37 = vmax.f32 %v252_v34, %v248_v35 }
 0x234   :  { %v255_v38 = vsub.f32 %v190_v18, %v253_v36  ;;  %v267_v39 = vsub.f32 %v228_v28, %v253_v36  ;;  %v261_v41 = vsub.f32 %v209_v15, %v253_v36  ;;  %v273_v47 = vsub.f32 %v247_v33, %v253_v36 }
 0x235   :  { %v256_v40 = vsub.f32 %v191_v17, %v254_v37  ;;  %v262_v43 = vsub.f32 %v210_v20, %v254_v37  ;;  %v268_v46 = vsub.f32 %v229_v24, %v254_v37  ;;  %v274_v49 = vsub.f32 %v248_v35, %v254_v37 }
 0x236   :  { %v257_v42 = vmul.f32 1.442695, %v255_v38  ;;  %v269_v45 = vmul.f32 1.442695, %v267_v39  ;;  %v263_v48 = vmul.f32 1.442695, %v261_v41 }
 0x237   :  { %v259_v44 = vmul.f32 1.442695, %v256_v40  ;;  %v265_v50 = vmul.f32 1.442695, %v262_v43  ;;  %v271_v51 = vmul.f32 1.442695, %v268_v46 }
 0x238   :  { %807 = vpow2.f32 %v257_v42  ;;  %v275_v52 = vmul.f32 1.442695, %v273_v47  ;;  %v277_v53 = vmul.f32 1.442695, %v274_v49  ;;  %v768_v43 = vld [vmem:[%s1204_s5 + $0x8] sm:$0xff] }
 0x239   :  { %809 = vpow2.f32 %v259_v44  ;;  %448 = vmatpush.bf16.msra.mxu1 %v768_v43  ;;  %v767_v44 = vld [vmem:[%s1204_s5] sm:$0xff] }
 0x23a   :  { %811 = vpow2.f32 %v269_v45 }
 0x23b   :  { %813 = vpow2.f32 %v263_v48 }
 0x23c   :  { %815 = vpow2.f32 %v265_v50 }
 0x23d   :  { %817 = vpow2.f32 %v271_v51  ;;  %449 = vmatpush.bf16.msra.mxu1 %v767_v44  ;;  %v798_v44 = vld [vmem:[%s1207_s8] ss:$0 sm:$0xff] }
 0x23e   :  { %v808_v55 = vpop.eup %807  ;;  %819 = vpow2.f32 %v275_v52 }
 0x23f   :  { %v810_v57 = vpop.eup %809  ;;  %821 = vpow2.f32 %v277_v53 }
 0x240   :  { %v812_v58 = vpop.eup %811 }
 0x241   :  { %v814_v59 = vpop.eup %813  ;;  %345 = vrot.lane.b32.xlu1 %v812_v58, %s915_s18 }
 0x242   :  { %v816_v60 = vpop.eup %815  ;;  %309 = vrot.lane.b32.xlu0 %v814_v59, %s915_s18  ;;  %v279_v61 = vadd.f32 %v814_v59, %v808_v55 }
 0x243   :  { %311 = vrot.lane.b32.xlu2 %v816_v60, %s915_s18  ;;  %v280_v62 = vadd.f32 %v816_v60, %v810_v57  ;;  %v818_v63 = vpop.eup %817 }
 0x244   :  { %v281_v1 = vadd.f32 %v812_v58, %v279_v61  ;;  %v820_v3 = vpop.eup %819 }
 0x245   :  { %v282_v4 = vadd.f32 %v818_v63, %v280_v62  ;;  %v822_v5 = vpop.eup %821 }
 0x246   :  { %v283_v6 = vadd.f32 %v820_v3, %v281_v1 }
 0x247   :  { %v284_v7 = vadd.f32 %v822_v5, %v282_v4 }
 0x248   :  { %823 = vrcp.f32 %v283_v6 }
 0x249   :  { %825 = vrcp.f32 %v284_v7 }
 0x24a   :  { %347 = vrot.lane.b32.xlu0 %v818_v63, %s915_s18 }
 0x24e   :  { %v824_v8 = vpop.eup %823 }
 0x24f   :  { %v826_v9 = vpop.eup %825  ;;  %289 = vrot.lane.b32.xlu2 %v824_v8, %s915_s18 }
 0x250   :  { %291 = vrot.lane.b32.xlu1 %v826_v9, %s915_s18 }
 0x257   :  { %381 = vrot.lane.b32.xlu2 %v820_v3, %s915_s18  ;;  %v796_v3 = vld [vmem:[%s1205_s6] ss:$0 sm:$0xff] }
 0x258   :  { %383 = vrot.lane.b32.xlu1 %v822_v5, %s915_s18 }
 0x29d   :  { %v312_v11 = vpop.permute.xlu2 %311 }
 0x2a9   :  { %v290_v12 = vpop.permute.xlu2 %289 }
 0x2aa   :  { %v1093_v13 = vmul.f32 %v290_v12, %v1046_v54 }
 0x2b1   :  { %v382_v18 = vpop.permute.xlu2 %381 }
 0x2b2   :  { %v387_v19 = vmul.f32 %v382_v18, %v1093_v13 }
 0x2b3   :  { %v346_v14 = vpop.permute.xlu1 %345 }
 0x2b4   :  { %v351_v15 = vmul.f32 %v346_v14, %v1093_v13  ;;  %v310_v16 = vpop.permute.xlu0 %309 }
 0x2b5   :  { %v315_v17 = vmul.f32 %v310_v16, %v1093_v13 }
 0x2b6   :  { %355 = vrot.lane.b32.xlu2 %v351_v15, %s925_s16 }
 0x2b7   :  { %319 = vrot.lane.b32.xlu0 %v315_v17, %s926_s17  ;;  %325 = vrot.lane.b32.xlu1 %v315_v17, %s920_s2 }
 0x2bc   :  { %v348_v21 = vpop.permute.xlu0 %347 }
 0x2bf   :  { %361 = vrot.lane.b32.xlu0 %v351_v15, %s923_s14  ;;  %391 = vrot.lane.b32.xlu1 %v387_v19, %s927_s19 }
 0x2c2   :  { %v292_v54 = vpop.permute.xlu1 %291 }
 0x2c3   :  { %v296_v20 = vmul.f32 %v292_v54, %v1051_v56 }
 0x2c5   :  { %v316_v22 = vmul.f32 %v312_v11, %v296_v20  ;;  %v352_v23 = vmul.f32 %v348_v21, %v296_v20 }
 0x2c7   :  { %321 = vrot.lane.b32.xlu2 %v316_v22, %s926_s17  ;;  %357 = vrot.lane.b32.xlu1 %v352_v23, %s925_s16  ;;  %s705_s16 = sshll.u32 %s1212_s13, 4  ;;  %s930_s17 = smov 8   ;;  %s706_s16 = int_to_ptr.hbm [resolvable:$true] %s705_s16 }
 0x2c8   :  { %327 = vrot.lane.b32.xlu0 %v316_v22, %s920_s2 }
 0x2ca   :  { %v384_v24 = vpop.permute.xlu1 %383 }
 0x2cb   :  { %v388_v25 = vmul.f32 %v384_v24, %v296_v20 }
 0x2cf   :  { %363 = vrot.lane.b32.xlu2 %v352_v23, %s923_s14  ;;  %399 = vrot.lane.b32.xlu1 %v388_v25, %s919_s29  ;;  %v769_v23 = vld [vmem:[#allocation5] sm:$0xff] }
 0x2d0   :  { %393 = vrot.lane.b32.xlu0 %v388_v25, %s927_s19 }
 0x2d7   :  { %397 = vrot.lane.b32.xlu2 %v387_v19, %s919_s29 }
 0x2d8   :  { %299 = vrot.lane.b32.xlu0 %v808_v55, %s915_s18 }
 0x2df   :  { %301 = vrot.lane.b32.xlu2 %v810_v57, %s915_s18 }
 0x310   :  { %v356_v56 = vpop.permute.xlu2 %355 }
 0x321   :  { %v322_v29 = vpop.permute.xlu2 %321 }
 0x329   :  { %v320_v26 = vpop.permute.xlu0 %319  ;;  %v326_v27 = vpop.permute.xlu1 %325 }
 0x32a   :  { %v331_v28 = vsel %vm242_vm10, %v320_v26, %v326_v27  ;;  %v364_v33 = vpop.permute.xlu2 %363 }
 0x32b   :  { %335 = vrot.lane.b32.xlu1 %v331_v28, %s915_s18 }
 0x331   :  { %v362_v30 = vpop.permute.xlu0 %361  ;;  %v392_v31 = vpop.permute.xlu1 %391 }
 0x332   :  { %v367_v32 = vsel %vm223_vm9, %v356_v56, %v362_v30  ;;  %v398_v38 = vpop.permute.xlu2 %397 }
 0x333   :  { %371 = vrot.lane.b32.xlu2 %v367_v32, %s915_s18  ;;  %v403_v41 = vsel %vm204_vm8, %v392_v31, %v398_v38 }
 0x339   :  { %v358_v35 = vpop.permute.xlu1 %357 }
 0x33a   :  { %v328_v34 = vpop.permute.xlu0 %327  ;;  %v368_v37 = vsel %vm223_vm9, %v358_v35, %v364_v33  ;;  %v302_v45 = vpop.permute.xlu2 %301 }
 0x33b   :  { %v332_v36 = vsel %vm242_vm10, %v322_v29, %v328_v34  ;;  %373 = vrot.lane.b32.xlu1 %v368_v37, %s915_s18  ;;  %v306_v48 = vmul.f32 %v302_v45, %v296_v20  ;;  %v770_v20 = vld [vmem:[#allocation5 + $0x8] sm:$0xff]  ;;  %vm677_vm10 = vcmask 523264  }
 0x33c   :  { %337 = vrot.lane.b32.xlu0 %v332_v36, %s915_s18  ;;  %544 = vmatpush.bf16.msra.mxu2 %v770_v20 }
 0x340   :  { %545 = vmatpush.bf16.msra.mxu2 %v769_v23 }
 0x341   :  { %v400_v40 = vpop.permute.xlu1 %399 }
 0x342   :  { %v394_v39 = vpop.permute.xlu0 %393 }
 0x343   :  { %v404_v42 = vsel %vm204_vm8, %v394_v39, %v400_v40 }
 0x344   :  { %407 = vrot.lane.b32.xlu0 %v403_v41, %s915_s18  ;;  %409 = vrot.lane.b32.xlu2 %v404_v42, %s915_s18 }
 0x34a   :  { %v300_v46 = vpop.permute.xlu0 %299 }
 0x34b   :  { %v305_v51 = vmul.f32 %v300_v46, %v1093_v13 }
 0x38d   :  { %v372_v49 = vpop.permute.xlu2 %371 }
 0x39d   :  { %v336_v47 = vpop.permute.xlu1 %335 }
 0x39e   :  { %v341_v53 = vadd.f32 %v336_v47, %v305_v51  ;;  %v410_v59 = vpop.permute.xlu2 %409 }
 0x3a0   :  { %v377_v58 = vadd.f32 %v372_v49, %v341_v53  ;;  %v799_v49 = vld [vmem:[%s1209_s10] ss:$0 sm:$0xff] }
 0x3ad   :  { %v374_v55 = vpop.permute.xlu1 %373 }
 0x3ae   :  { %v338_v50 = vpop.permute.xlu0 %337 }
 0x3af   :  { %v342_v52 = vadd.f32 %v338_v50, %v306_v48 }
 0x3b1   :  { %v378_v57 = vadd.f32 %v374_v55, %v342_v52 }
 0x3b3   :  { %v414_v61 = vadd.f32 %v410_v59, %v378_v57 }
 0x3b6   :  { %v408_v60 = vpop.permute.xlu0 %407 }
 0x3b7   :  { %v413_v62 = vadd.f32 %v408_v60, %v377_v58 }
 0x3b9   :  { %v415_v63 = vpack.c.bf16 %v414_v61, %v413_v62 }
 0x3bb   :  { %425 = vrot.lane.b32.xlu1 %v415_v63, %s915_s18 }
 0x42d   :  { %v426_v1 = vpop.permute.xlu1 %425 }
 0x42e   :  { %736 = vmatmul.msk.bf16.vlgmr.msra.gmra.mxu1 %vm78_vm0, %v426_v1 }
 0x4ab   :  { %v451_v4 = vpop.f32.mrf.mxu1 }
 0x4ac   :  { %v452_v5 = vadd.f32 %v796_v3, %v451_v4 }
 0x4ae   :  { %v1132_v6 = vadd.f32 %v452_v5, %v1012_v0 }
 0x4b0   :  { %v458_v7 = vsel %vm78_vm0, %v1132_v6, 0.0 }
 0x4b1   :  { %459 = vadd.xlane.f32.xlu0 %v458_v7 }
 0x4b3   :  { %v453_v8 = vpop.f32.mrf.mxu1 }
 0x4b4   :  { %v454_v9 = vadd.f32 %v796_v3, %v453_v8 }
 0x4b6   :  { %v1137_v11 = vadd.f32 %v454_v9, %v1019_v2  ;;  %v774_v9 = vld [vmem:[%s1210_s11 + $0x18] sm:$0xff] }
 0x4b7   :  { %685 = vmatpush.bf16.msra.mxu3 %v774_v9 }
 0x4b8   :  { %v461_v12 = vsel %vm78_vm0, %v1137_v11, 0.0 }
 0x4b9   :  { %462 = vadd.xlane.f32.xlu2 %v461_v12 }
 0x524   :  { %v460_v13 = vpop.xlane.xlu0 %459 }
 0x525   :  { %v464_v14 = vmul.f32 %v460_v13, %v1023_v10 }
 0x527   :  { %v466_v15 = vsub.f32 %v1132_v6, %v464_v14 }
 0x529   :  { %v468_v0 = vmul.f32 %v466_v15, %v466_v15 }
 0x52b   :  { %v470_v16 = vsel %vm78_vm0, %v468_v0, 0.0 }
 0x52c   :  { %v463_v17 = vpop.xlane.xlu2 %462  ;;  %471 = vadd.xlane.f32.xlu1 %v470_v16 }
 0x52d   :  { %v465_v18 = vmul.f32 %v463_v17, %v1023_v10 }
 0x52f   :  { %v467_v19 = vsub.f32 %v1137_v11, %v465_v18  ;;  %v773_v18 = vld [vmem:[%s1210_s11 + $0x10] sm:$0xff] }
 0x530   :  { %686 = vmatpush.bf16.msra.mxu3 %v773_v18 }
 0x531   :  { %v469_v2 = vmul.f32 %v467_v19, %v467_v19 }
 0x533   :  { %v473_v54 = vsel %vm78_vm0, %v469_v2, 0.0 }
 0x534   :  { %474 = vadd.xlane.f32.xlu0 %v473_v54 }
 0x59f   :  { %v472_v21 = vpop.xlane.xlu1 %471 }
 0x5a0   :  { %v476_v22 = vmul.f32 %v472_v21, %v1023_v10 }
 0x5a2   :  { %v478_v24 = vadd.f32 1e-06, %v476_v22 }
 0x5a4   :  { %827 = vrsqrt.f32 %v478_v24  ;;  %vm486_vm12 = vweird.f32 %v478_v24 }
 0x5a7   :  { %v475_v25 = vpop.xlane.xlu0 %474 }
 0x5a8   :  { %v477_v56 = vmul.f32 %v475_v25, %v1023_v10  ;;  %v797_v10 = vld [vmem:[%s1206_s7] ss:$0 sm:$0xff] }
 0x5aa   :  { %v828_v26 = vpop.eup %827  ;;  %v479_v27 = vadd.f32 1e-06, %v477_v56 }
 0x5ab   :  { %v481_v28 = vmul.f32 %v828_v26, %v478_v24  ;;  %vm487_vm11 = vweird.f32 %v828_v26  ;;  %v772_v24 = vld [vmem:[%s1210_s11 + $0x8] sm:$0xff] }
 0x5ac   :  { %829 = vrsqrt.f32 %v479_v27  ;;  %vm488_vm13 = vmor %vm486_vm12, %vm487_vm11  ;;  %vm496_vm15 = vweird.f32 %v479_v27  ;;  %687 = vmatpush.bf16.msra.mxu3 %v772_v24 }
 0x5ad   :  { %v482_v29 = vmul.f32 %v828_v26, %v481_v28 }
 0x5af   :  { %v483_v30 = vmul.f32 0.5, %v482_v29  ;;  %v771_v29 = vld [vmem:[%s1210_s11] sm:$0xff] }
 0x5b0   :  { %688 = vmatpush.bf16.msra.mxu3 %v771_v29 }
 0x5b1   :  { %v484_v31 = vsub.f32 1.5, %v483_v30 }
 0x5b2   :  { %v830_v32 = vpop.eup %829 }
 0x5b3   :  { %v485_v33 = vmul.f32 %v828_v26, %v484_v31  ;;  %v491_v34 = vmul.f32 %v830_v32, %v479_v27  ;;  %vm497_vm14 = vweird.f32 %v830_v32 }
 0x5b4   :  { %vm498_vm1 = vmor %vm496_vm15, %vm497_vm14 }
 0x5b5   :  { %v492_v35 = vmul.f32 %v830_v32, %v491_v34  ;;  %v489_v36 = vsel %vm488_vm13, %v828_v26, %v485_v33 }
 0x5b6   :  { %v500_v39 = vmul.f32 %v489_v36, %v466_v15 }
 0x5b7   :  { %v493_v37 = vmul.f32 0.5, %v492_v35 }
 0x5b8   :  { %v506_v43 = vmul.f32 %v797_v10, %v500_v39 }
 0x5b9   :  { %v494_v38 = vsub.f32 1.5, %v493_v37 }
 0x5ba   :  { %v512_v46 = vadd.f32 %v798_v44, %v506_v43 }
 0x5bb   :  { %v495_v40 = vmul.f32 %v830_v32, %v494_v38 }
 0x5bd   :  { %v499_v41 = vsel %vm498_vm1, %v830_v32, %v495_v40 }
 0x5be   :  { %v501_v42 = vmul.f32 %v499_v41, %v467_v19 }
 0x5c0   :  { %v507_v45 = vmul.f32 %v797_v10, %v501_v42 }
 0x5c2   :  { %v513_v47 = vadd.f32 %v798_v44, %v507_v45 }
 0x5c4   :  { %v514_v48 = vpack.c.bf16 %v513_v47, %v512_v46 }
 0x5c6   :  { %745 = vmatmul.msk.bf16.vlgmr.msra.gmra.mxu2 %vm78_vm0, %v514_v48 }
 0x649   :  { %v547_v50 = vpop.f32.mrf.mxu2 }
 0x64a   :  { %v1159_v51 = vadd.f32 %v799_v49, %v547_v50 }
 0x64c   :  { %v1162_v52 = vmul.f32 0.70710677, %v1159_v51 }
 0x64e   :  { %v556_v53 = vmul.f32 %v1162_v52, %v1162_v52 }
 0x650   :  { %v557_v55 = vmin.f32 %v556_v53, 16.0 }
 0x651   :  { %v549_v57 = vpop.f32.mrf.mxu2 }
 0x652   :  { %v558_v58 = vmul.f32 2.1237322e-06, %v557_v55  ;;  %v569_v59 = vmul.f32 3.8918573e-05, %v557_v55  ;;  %v1166_v60 = vadd.f32 %v799_v49, %v549_v57 }
 0x654   :  { %v559_v61 = vadd.f32 0.00028619796, %v558_v58  ;;  %v570_v62 = vadd.f32 0.001143296, %v569_v59  ;;  %v1169_v63 = vmul.f32 0.70710677, %v1166_v60 }
 0x656   :  { %v571_v1 = vmul.f32 %v570_v62, %v557_v55  ;;  %v596_v3 = vmul.f32 %v1169_v63, %v1169_v63  ;;  %v560_v4 = vmul.f32 %v559_v61, %v557_v55 }
 0x658   :  { %v572_v5 = vadd.f32 0.014752088, %v571_v1  ;;  %v597_v7 = vmin.f32 %v596_v3, 16.0  ;;  %v561_v14 = vadd.f32 0.0036580483, %v560_v4 }
 0x65a   :  { %v573_v8 = vmul.f32 %v572_v5, %v557_v55  ;;  %v598_v12 = vmul.f32 2.1237322e-06, %v597_v7  ;;  %v609_v13 = vmul.f32 3.8918573e-05, %v597_v7  ;;  %v562_v54 = vmul.f32 %v561_v14, %v557_v55 }
 0x65c   :  { %v574_v15 = vadd.f32 0.112945676, %v573_v8  ;;  %v599_v0 = vadd.f32 0.00028619796, %v598_v12  ;;  %v610_v16 = vadd.f32 0.001143296, %v609_v13 }
 0x65d   :  { %v563_v56 = vadd.f32 0.05243302, %v562_v54 }
 0x65e   :  { %v575_v17 = vmul.f32 %v574_v15, %v557_v55  ;;  %v600_v19 = vmul.f32 %v599_v0, %v597_v7  ;;  %v611_v2 = vmul.f32 %v610_v16, %v597_v7  ;;  %v552_v15 = vmul.f32 0.5, %v1159_v51 }
 0x65f   :  { %v564_v31 = vmul.f32 %v563_v56, %v557_v55  ;;  %v553_v0 = vmul.f32 0.5, %v1166_v60 }
 0x660   :  { %v576_v20 = vadd.f32 0.4994258, %v575_v17  ;;  %v601_v21 = vadd.f32 0.0036580483, %v600_v19  ;;  %v612_v22 = vadd.f32 0.014752088, %v611_v2 }
 0x661   :  { %v565_v36 = vadd.f32 0.18741608, %v564_v31 }
 0x662   :  { %v577_v23 = vmul.f32 %v576_v20, %v557_v55  ;;  %v613_v25 = vmul.f32 %v612_v22, %v597_v7  ;;  %v602_v27 = vmul.f32 %v601_v21, %v597_v7 }
 0x663   :  { %v566_v40 = vmul.f32 %v565_v36, %v557_v55 }
 0x664   :  { %v578_v26 = vadd.f32 1.0, %v577_v23  ;;  %v614_v28 = vadd.f32 0.112945676, %v613_v25  ;;  %v603_v32 = vadd.f32 0.05243302, %v602_v27 }
 0x665   :  { %v567_v46 = vadd.f32 1.1283791, %v566_v40 }
 0x666   :  { %831 = vrcp.f32 %v578_v26  ;;  %v615_v30 = vmul.f32 %v614_v28, %v597_v7  ;;  %v604_v38 = vmul.f32 %v603_v32, %v597_v7  ;;  %v590_v42 = vand.u32 2147483648, %v578_v26 }
 0x667   :  { %v588_v44 = vand.u32 2147483647, %v578_v26  ;;  %vm584_vm3 = vweird.f32 %v578_v26  ;;  %v568_v58 = vmul.f32 %v567_v46, %v1162_v52 }
 0x668   :  { %v616_v33 = vadd.f32 0.4994258, %v615_v30  ;;  %v605_v43 = vadd.f32 0.18741608, %v604_v38  ;;  %v591_v49 = vor.u32 1.1754944e-38, %v590_v42 }
 0x669   :  { %vm589_vm5 = vcmp.eq.f32.partialorder %v588_v44, 8.507059e+37 }
 0x66a   :  { %v617_v34 = vmul.f32 %v616_v33, %v597_v7  ;;  %v606_v50 = vmul.f32 %v605_v43, %v597_v7 }
 0x66c   :  { %v832_v35 = vpop.eup %831  ;;  %v618_v39 = vadd.f32 1.0, %v617_v34  ;;  %v607_v55 = vadd.f32 1.1283791, %v606_v50 }
 0x66d   :  { %v580_v37 = vmul.f32 %v832_v35, %v578_v26  ;;  %vm585_vm2 = vweird.f32 %v832_v35 }
 0x66e   :  { %833 = vrcp.f32 %v618_v39  ;;  %vm586_vm4 = vmor %vm584_vm3, %vm585_vm2  ;;  %v630_v61 = vand.u32 2147483648, %v618_v39  ;;  %v628_v3 = vand.u32 2147483647, %v618_v39  ;;  %vm624_vm7 = vweird.f32 %v618_v39 }
 0x66f   :  { %v581_v10 = vsub.f32 1.0, %v580_v37  ;;  %v608_v9 = vmul.f32 %v607_v55, %v1169_v63  ;;  %v800_v63 = vld [vmem:[%s1211_s12] ss:$0 sm:$0xff]  ;;  %s929_s12 = smov 128  }
 0x670   :  { %v631_v5 = vor.u32 1.1754944e-38, %v630_v61  ;;  %vm629_vm9 = vcmp.eq.f32.partialorder %v628_v3, 8.507059e+37 }
 0x671   :  { %v582_v41 = vmul.f32 %v832_v35, %v581_v10 }
 0x673   :  { %v583_v45 = vadd.f32 %v832_v35, %v582_v41 }
 0x674   :  { %v834_v47 = vpop.eup %833 }
 0x675   :  { %v587_v48 = vsel %vm586_vm4, %v832_v35, %v583_v45  ;;  %v620_v53 = vmul.f32 %v834_v47, %v618_v39  ;;  %vm625_vm6 = vweird.f32 %v834_v47 }
 0x676   :  { %v592_v57 = vsel %vm589_vm5, %v591_v49, %v587_v48  ;;  %vm626_vm8 = vmor %vm624_vm7, %vm625_vm6 }
 0x677   :  { %v621_v59 = vsub.f32 1.0, %v620_v53  ;;  %v593_v62 = vmul.f32 %v592_v57, %v568_v58 }
 0x679   :  { %v622_v1 = vmul.f32 %v834_v47, %v621_v59  ;;  %v746_v8 = vclamps-f32 %v593_v62, 1.0 }
 0x67b   :  { %v623_v4 = vadd.f32 %v834_v47, %v622_v1  ;;  %v636_v14 = vadd.f32 1.0, %v746_v8 }
 0x67d   :  { %v627_v7 = vsel %vm626_vm8, %v834_v47, %v623_v4  ;;  %v638_v17 = vmul.f32 %v636_v14, %v552_v15 }
 0x67e   :  { %v632_v12 = vsel %vm629_vm9, %v631_v5, %v627_v7 }
 0x67f   :  { %v633_v13 = vmul.f32 %v632_v12, %v608_v9 }
 0x681   :  { %v747_v52 = vclamps-f32 %v633_v13, 1.0 }
 0x683   :  { %v637_v16 = vadd.f32 1.0, %v747_v52 }
 0x685   :  { %v639_v18 = vmul.f32 %v637_v16, %v553_v0 }
 0x687   :  { %v640_v19 = vpack.c.bf16 %v639_v18, %v638_v17 }
 0x689   :  { %764 = vmatmul.msk.bf16.vlgmr.msra.gmra.mxu3 %vm677_vm10, %v640_v19 }
 0x70c   :  { %v690_v2 = vpop.f32.mrf.mxu3 }
 0x70d   :  { %v691_v54 = vadd.f32 %v800_v63, %v690_v2 }
 0x70f   :  { %v695_v20 = vadd.f32 %v691_v54, %v1132_v6 }
 0x711   :  { %697 = vst.msk [vmem:[#allocation7] sm:$0xff] %vm78_vm0, %v695_v20 }
 0x714   :  { %v692_v51 = vpop.f32.mrf.mxu3 }
 0x715   :  { %v693_v60 = vadd.f32 %v800_v63, %v692_v51 }
 0x717   :  { %v696_v21 = vadd.f32 %v693_v60, %v1137_v11 }
 0x719   :  { %698 = vst.msk [vmem:[#allocation7 + $0x8] sm:$0xff] %vm78_vm0, %v696_v21 }
 0x71a   :  { %711 = dma.vmem_to_hbm [thread:$0]  %s704_s30, 256, %s706_s16, [#allocation4], %s929_s12, %s929_s12, %s930_s17  }
 0x71b   :  { %911 = dma.done.wait [#allocation4], 256  }
 0x71c   :  { %912 = vsyncadd [#allocation4], 4294967040 }
 0x71d   :  { %716 = vsyncpa [#allocation3], 1 }
 0x71e   :  { %717 = vsyncpa [#allocation6], 1 }
 0x71f   :  { %718 = vsyncpa [#allocation4], 1 }

</bundles_post_ra>
